<compile_context>
chip_gen: v7x
topology: tpu7x:2x2x1
jax: 0.10.0
libtpu: 0.0.40
codegen_flags: <defaults>
</compile_context>

<pallas_src>
import functools

import jax
import jax.numpy as jnp
from jax.experimental import pallas as pl
from jax.experimental.pallas import tpu as pltpu


VMEM_LIMIT = 32 * 1024 * 1024     # explicit scoped-VMEM cap (v5e default is only 16 MiB)
RESIDENT_CAP = 20 * 1024 * 1024   # cap for the VMEM-resident Z operand (safe on v7x)


def _round_up(v, m):
    return (v + m - 1) // m * m


def _pad2d(a, rows, cols):
    r, c = a.shape
    return jnp.pad(a, ((0, rows - r), (0, cols - c)))


def _pick_tile(total, candidates, min_blocks=1):
    for t in candidates:
        if total % t == 0 and total // t >= min_blocks:
            return t
    return 128


# ----------------------------------------------------------------------------
# Kernel 1: fused GCN layer    out = ReLU( A_hat @ (mask(Z) @ W) + b )
#   A_hat streamed (tm, tk) bf16 tiles; Z / W / bias (and mask, token for the
#   first layer) VMEM-resident; f32 accumulation; bf16 output.
# ----------------------------------------------------------------------------
def _gcn_layer_kernel(a_ref, z_ref, w_ref, b_ref, *rest, tk, masked):
    if masked:
        m_ref, tok_ref, out_ref, acc_ref = rest
    else:
        out_ref, acc_ref = rest

    j = pl.program_id(1)

    @pl.when(j == 0)
    def _():
        acc_ref[...] = jnp.zeros_like(acc_ref)

    off = pl.multiple_of(j * tk, tk)
    z_tile = z_ref[pl.ds(off, tk), :]                 # (tk, F) from resident Z
    if masked:
        m = m_ref[pl.ds(off, tk), :]                  # (tk, 1)
        tok = tok_ref[...]                            # (1, F)
        z_tile = z_tile.astype(jnp.float32) * (1.0 - m) + m * tok

    # T tile = Z_j @ W, recomputed per row block on free MXU slack (mem-bound).
    t = jnp.dot(z_tile.astype(jnp.bfloat16), w_ref[...],
                preferred_element_type=jnp.float32).astype(jnp.bfloat16)
    acc_ref[...] += jnp.dot(a_ref[...], t, preferred_element_type=jnp.float32)

    @pl.when(j == pl.num_programs(1) - 1)
    def _():
        r = jnp.maximum(acc_ref[...] + b_ref[...], 0.0)
        out_ref[...] = r.astype(out_ref.dtype)


def gcn_layer(a_hat, z, w, bias, *, mask=None, token=None, tm, tk,
              out_dtype=jnp.bfloat16):
    n_pad = a_hat.shape[0]
    f = w.shape[0]
    assert z.shape == (n_pad, f) and w.shape == (f, f) and bias.shape == (1, f)
    assert n_pad % tm == 0 and n_pad % tk == 0 and f % 128 == 0

    masked = mask is not None
    kernel = functools.partial(_gcn_layer_kernel, tk=tk, masked=masked)

    in_specs = [
        pl.BlockSpec((tm, tk), lambda i, j: (i, j)),        # A_hat tile (streamed)
        pl.BlockSpec((n_pad, f), lambda i, j: (0, 0)),      # Z (resident, fetched once)
        pl.BlockSpec((f, f), lambda i, j: (0, 0)),          # W (resident)
        pl.BlockSpec((1, f), lambda i, j: (0, 0)),          # bias (resident)
    ]
    args = [a_hat, z, w, bias]
    if masked:
        in_specs += [
            pl.BlockSpec((n_pad, 1), lambda i, j: (0, 0)),  # mask column (resident)
            pl.BlockSpec((1, f), lambda i, j: (0, 0)),      # mask token (resident)
        ]
        args += [mask, token]

    row_blocks = n_pad // tm
    flops = 2 * n_pad * f * f * row_blocks + 2 * n_pad * n_pad * f
    bytes_accessed = (
        a_hat.size * a_hat.dtype.itemsize
        + z.size * z.dtype.itemsize
        + w.size * w.dtype.itemsize
        + bias.size * bias.dtype.itemsize
        + n_pad * f * jnp.dtype(out_dtype).itemsize
    )

    return pl.pallas_call(
        kernel,
        out_shape=jax.ShapeDtypeStruct((n_pad, f), out_dtype),
        grid_spec=pltpu.PrefetchScalarGridSpec(
            num_scalar_prefetch=0,
            grid=(row_blocks, n_pad // tk),
            in_specs=in_specs,
            out_specs=pl.BlockSpec((tm, f), lambda i, j: (i, 0)),
            scratch_shapes=[pltpu.VMEM((tm, f), jnp.float32)],
        ),
        compiler_params=pltpu.CompilerParams(
            dimension_semantics=("parallel", "arbitrary"),
            vmem_limit_bytes=VMEM_LIMIT,
        ),
        cost_estimate=pl.CostEstimate(
            flops=int(flops), transcendentals=0,
            bytes_accessed=int(bytes_accessed)),
    )(*args)


# ----------------------------------------------------------------------------
# Kernel 2: fused decoder  (Linear -> ReLU) x (L-1) -> Linear, one call.
#   All padded weights/biases VMEM-resident; row-parallel over (tm, F) tiles.
# ----------------------------------------------------------------------------
def _decoder_kernel(z_ref, *rest, n_layers):
    w_refs = rest[:n_layers]
    b_refs = rest[n_layers:2 * n_layers]
    out_ref = rest[2 * n_layers]

    r = z_ref[...]
    for li in range(n_layers):
        acc = jnp.dot(r, w_refs[li][...], preferred_element_type=jnp.float32)
        acc = acc + b_refs[li][...]
        if li < n_layers - 1:
            r = jnp.maximum(acc, 0.0).astype(jnp.bfloat16)
        else:
            out_ref[...] = acc.astype(out_ref.dtype)


def decoder_fused(z, ws, bs, *, tm):
    n_pad, f = z.shape
    nl = len(ws)
    assert n_pad % tm == 0 and f % 128 == 0
    kernel = functools.partial(_decoder_kernel, n_layers=nl)

    in_specs = [pl.BlockSpec((tm, f), lambda i: (i, 0))]
    in_specs += [pl.BlockSpec((f, f), lambda i: (0, 0)) for _ in ws]
    in_specs += [pl.BlockSpec((1, f), lambda i: (0, 0)) for _ in bs]

    return pl.pallas_call(
        kernel,
        out_shape=jax.ShapeDtypeStruct((n_pad, f), jnp.float32),
        grid_spec=pltpu.PrefetchScalarGridSpec(
            num_scalar_prefetch=0,
            grid=(n_pad // tm,),
            in_specs=in_specs,
            out_specs=pl.BlockSpec((tm, f), lambda i: (i, 0)),
        ),
        compiler_params=pltpu.CompilerParams(
            dimension_semantics=("parallel",),
            vmem_limit_bytes=VMEM_LIMIT,
        ),
    )(z, *ws, *bs)


# ----------------------------------------------------------------------------
# One-time preparation: pad + bf16-cast A_hat / weights / biases, pick tiles.
# ----------------------------------------------------------------------------
def prepare_graphmae(a_hat, enc_ws, enc_bs, dec_ws, dec_bs, mask_token):
    n = a_hat.shape[0]
    fin = enc_ws[0].shape[0]
    hidden = enc_ws[0].shape[1]
    f_pad = max(_round_up(fin, 128), _round_up(hidden, 128))
    n_pad = _round_up(max(n, 256), 256)

    # TODO(synk): for graphs where the resident Z operand exceeds RESIDENT_CAP,
    # add a streamed-Z fallback (tile Z along rows like A_hat).
    assert 2 * n_pad * f_pad * 4 <= RESIDENT_CAP, "graph too large for resident-Z path"

    tm = _pick_tile(n_pad, (512, 256, 128), min_blocks=2)     # >=2 row blocks (v7x 2 TCs)
    tk = _pick_tile(n_pad, (1024, 512, 256, 128), min_blocks=1)
    tm_dec = _pick_tile(n_pad, (512, 256, 128), min_blocks=2)

    def pw(w):
        return _pad2d(w, f_pad, f_pad).astype(jnp.bfloat16)

    def pb(b):
        return _pad2d(b, 1, f_pad).astype(jnp.float32)

    # TODO(synk): on v7x the adjacency could be stored as float8_e4m3 to halve
    # the dominant N^2 HBM stream; kept bf16 here for v5e/v6e portability.
    return dict(
        n=n, fin=fin, n_pad=n_pad, f_pad=f_pad, tm=tm, tk=tk, tm_dec=tm_dec,
        ap=_pad2d(a_hat, n_pad, n_pad).astype(jnp.bfloat16),
        enc_wp=[pw(w) for w in enc_ws], enc_bp=[pb(b) for b in enc_bs],
        dec_wp=[pw(w) for w in dec_ws], dec_bp=[pb(b) for b in dec_bs],
        tokp=_pad2d(mask_token, 1, f_pad).astype(jnp.float32),
    )


# ----------------------------------------------------------------------------
# Full GraphMAE forward (fused mask+GCN encoder x3 -> fused decoder)
# ----------------------------------------------------------------------------
def graphmae_forward_pallas(x, mask, prep):
    """Returns the full reconstruction (N, Fin) in f32."""
    n, fin = x.shape
    n_pad, f_pad = prep["n_pad"], prep["f_pad"]
    xp = _pad2d(x, n_pad, f_pad).astype(jnp.float32)
    mp = _pad2d(mask, n_pad, 1).astype(jnp.float32)
    tm, tk = prep["tm"], prep["tk"]

    # Encoder layer 0 fuses the mask-token prologue into the GCN matmuls.
    z = gcn_layer(prep["ap"], xp, prep["enc_wp"][0], prep["enc_bp"][0],
                  mask=mp, token=prep["tokp"], tm=tm, tk=tk)
    # TODO(synk): F.dropout(training=True) omitted — eval-mode identity dropout.
    for w, b in zip(prep["enc_wp"][1:], prep["enc_bp"][1:]):
        z = gcn_layer(prep["ap"], z, w, b, tm=tm, tk=tk)

    # Decoder: all 3 Linear layers in one row-parallel kernel.
    r = decoder_fused(z, prep["dec_wp"], prep["dec_bp"], tm=prep["tm_dec"])
    return r[:n, :fin]


# ----------------------------------------------------------------------------
# Plain-JAX glue: graph normalization, parameter init, f32 reference
# ----------------------------------------------------------------------------
def build_normalized_adjacency(edge_index, num_nodes, edge_weight=None):
    """Dense A_hat = D^{-1/2} (A + I) D^{-1/2}  (GCNConv normalization)."""
    src, dst = edge_index[0], edge_index[1]
    if edge_weight is None:
        edge_weight = jnp.ones(src.shape[0], dtype=jnp.float32)
    a = jnp.zeros((num_nodes, num_nodes), dtype=jnp.float32)
    a = a.at[dst, src].add(edge_weight)                 # source -> target
    a = a + jnp.eye(num_nodes, dtype=jnp.float32)       # self loops
    deg = a.sum(axis=1)
    dinv = jnp.where(deg > 0, 1.0 / jnp.sqrt(deg), 0.0)
    return dinv[:, None] * a * dinv[None, :]


def init_params(key, in_channels, hidden_channels, num_layers=3):
    keys = jax.random.split(key, 4 * num_layers)
    enc_ws, enc_bs, dec_ws, dec_bs = [], [], [], []
    ki = 0
    for i in range(num_layers):
        fan_in = in_channels if i == 0 else hidden_channels
        enc_ws.append(0.1 * jax.random.normal(
            keys[ki], (fan_in, hidden_channels), jnp.float32)); ki += 1
        enc_bs.append(0.05 * jax.random.normal(
            keys[ki], (1, hidden_channels), jnp.float32)); ki += 1
    for i in range(num_layers):
        fan_out = in_channels if i == num_layers - 1 else hidden_channels
        dec_ws.append(0.1 * jax.random.normal(
            keys[ki], (hidden_channels, fan_out), jnp.float32)); ki += 1
        dec_bs.append(0.05 * jax.random.normal(
            keys[ki], (1, fan_out), jnp.float32)); ki += 1
    # encoder_mask_token is initialized to zeros in the PyTorch module
    mask_token = jnp.zeros((1, in_channels), jnp.float32)
    return enc_ws, enc_bs, dec_ws, dec_bs, mask_token


def reference_forward(x, mask, token, a_hat, enc_ws, enc_bs, dec_ws, dec_bs):
    """Pure-JAX f32 reference of the same forward (eval-mode dropout)."""
    z = x * (1.0 - mask) + mask * token
    for w, b in zip(enc_ws, enc_bs):
        z = jnp.maximum(a_hat @ (z @ w) + b, 0.0)
    r = z
    for i, (w, b) in enumerate(zip(dec_ws, dec_bs)):
        r = r @ w + b
        if i < len(dec_ws) - 1:
            r = jnp.maximum(r, 0.0)
    return r


if __name__ == "__main__":
    # 256 nodes so the A_hat matmul actually tiles (2 row blocks -> both TCs on v7x).
    N, F_IN, HIDDEN = 256, 8, 32
    MASK_RATIO = 0.5

    key = jax.random.PRNGKey(0)
    k_x, k_perm, k_params = jax.random.split(key, 3)

    # Node features
    x = jax.random.normal(k_x, (N, F_IN), jnp.float32)

    # Deterministic bidirectional ring graph
    src = jnp.arange(N, dtype=jnp.int32)
    dst = (src + 1) % N
    edge_index = jnp.stack(
        [jnp.concatenate([src, dst]), jnp.concatenate([dst, src])], axis=0
    )
    a_hat = build_normalized_adjacency(edge_index, N)
    # TODO(synk): for large sparse graphs, a CSR/scalar-prefetch gather
    # formulation would avoid materializing the dense N x N adjacency.

    # encoding_mask: random node subset of size mask_ratio * N (glue-side RNG)
    # TODO(synk): replace_ratio > 0 noise-replacement path not implemented
    # (module default replace_ratio=0.0).
    perm = jax.random.permutation(k_perm, N)
    num_mask = int(MASK_RATIO * N)
    mask_nodes = perm[:num_mask]
    mask = jnp.zeros((N, 1), jnp.float32).at[mask_nodes, 0].set(1.0)

    enc_ws, enc_bs, dec_ws, dec_bs, mask_token = init_params(
        k_params, F_IN, HIDDEN, num_layers=3
    )

    # Pad + bf16-cast A_hat and all parameters ONCE (hoisted out of forward).
    prep = prepare_graphmae(a_hat, enc_ws, enc_bs, dec_ws, dec_bs, mask_token)

    # Run the Pallas forward (full reconstruction), then gather masked rows.
    recon = graphmae_forward_pallas(x, mask, prep)
    recon = jax.block_until_ready(recon)

    x_masked = x[mask_nodes]          # forward() return value #1
    recon_masked = recon[mask_nodes]  # forward() return value #2
    jax.block_until_ready((x_masked, recon_masked))

    assert x_masked.shape == (num_mask, F_IN)
    assert recon_masked.shape == (num_mask, F_IN)
    assert bool(jnp.all(jnp.isfinite(recon_masked)))

    # Numerical sanity check vs plain-JAX f32 reference (bf16 MXU tolerance).
    ref = reference_forward(x, mask, mask_token, a_hat,
                            enc_ws, enc_bs, dec_ws, dec_bs)
    max_err = float(jnp.max(jnp.abs(recon - ref)))
    assert max_err < 0.1, max_err

    print("KERNEL_OK")
</pallas_src>

<mosaic_0001>
module attributes {stable_mosaic.version = 11 : i64} {
  func.func @_gcn_layer_kernel(%arg0: i32, %arg1: i32, %arg2: memref<128x256xbf16, #tpu.memory_space<vmem>>, %arg3: memref<256x128xf32, #tpu.memory_space<vmem>>, %arg4: memref<128x128xbf16, #tpu.memory_space<vmem>>, %arg5: memref<1x128xf32, #tpu.memory_space<vmem>>, %arg6: memref<256x1xf32, #tpu.memory_space<vmem>>, %arg7: memref<1x128xf32, #tpu.memory_space<vmem>>, %arg8: memref<128x128xbf16, #tpu.memory_space<vmem>>, %arg9: memref<128x128xf32, #tpu.memory_space<vmem>>) attributes {dimension_semantics = [#tpu.dimension_semantics<parallel>, #tpu.dimension_semantics<arbitrary>], iteration_bounds = array<i64: 2, 1>, scalar_prefetch = 0 : i64, scratch_operands = 1 : i64, tpu.core_type = #tpu.core_type<tc>, window_params = [{transform_indices = @transform_0, window_bounds = array<i64: 128, 256>}, {pipeline_mode = #tpu.pipeline_mode<synchronous>, transform_indices = @transform_1, window_bounds = array<i64: 256, 128>}, {pipeline_mode = #tpu.pipeline_mode<synchronous>, transform_indices = @transform_2, window_bounds = array<i64: 128, 128>}, {pipeline_mode = #tpu.pipeline_mode<synchronous>, transform_indices = @transform_3, window_bounds = array<i64: 1, 128>}, {pipeline_mode = #tpu.pipeline_mode<synchronous>, transform_indices = @transform_4, window_bounds = array<i64: 256, 1>}, {pipeline_mode = #tpu.pipeline_mode<synchronous>, transform_indices = @transform_5, window_bounds = array<i64: 1, 128>}, {transform_indices = @transform_6, window_bounds = array<i64: 128, 128>}]} {
    %c0_i32 = arith.constant 0 : i32
    %0 = arith.cmpi eq, %arg1, %c0_i32 : i32
    %1 = arith.extui %0 : i1 to i32
    %c0_i32_0 = arith.constant 0 : i32
    %2 = arith.cmpi ne, %1, %c0_i32_0 : i32
    scf.if %2 {
      %cst_16 = arith.constant 0.000000e+00 : f32
      %30 = vector.broadcast %cst_16 : f32 to vector<128x128xf32>
      %c0_17 = arith.constant 0 : index
      %c0_18 = arith.constant 0 : index
      %31 = vector.load %arg9[%c0_17, %c0_18] : memref<128x128xf32, #tpu.memory_space<vmem>>, vector<128x128xf32>
      tpu.vector_store %arg9[%c0_17, %c0_18], %30 {strides = array<i32>} : memref<128x128xf32, #tpu.memory_space<vmem>>, vector<128x128xf32>,
    } else {
    }
    %c256_i32 = arith.constant 256 : i32
    %3 = arith.muli %arg1, %c256_i32 : i32
    %4 = tpu.assume_multiple %3, 256 : i32
    %5 = arith.index_cast %4 : i32 to index
    %c0 = arith.constant 0 : index
    %6 = vector.load %arg3[%5, %c0] : memref<256x128xf32, #tpu.memory_space<vmem>>, vector<256x128xf32>
    %7 = arith.index_cast %4 : i32 to index
    %c0_1 = arith.constant 0 : index
    %8 = vector.load %arg6[%7, %c0_1] : memref<256x1xf32, #tpu.memory_space<vmem>>, vector<256x1xf32>
    %c0_2 = arith.constant 0 : index
    %c0_3 = arith.constant 0 : index
    %9 = vector.load %arg7[%c0_2, %c0_3] : memref<1x128xf32, #tpu.memory_space<vmem>>, vector<1x128xf32>
    %cst = arith.constant 1.000000e+00 : f32
    %10 = vector.broadcast %cst : f32 to vector<256x1xf32>
    %11 = arith.subf %10, %8 : vector<256x1xf32>
    %12 = vector.broadcast %11 : vector<256x1xf32> to vector<256x128xf32>
    %13 = arith.mulf %6, %12 : vector<256x128xf32>
    %14 = vector.broadcast %8 : vector<256x1xf32> to vector<256x128xf32>
    %15 = vector.broadcast %9 : vector<1x128xf32> to vector<256x128xf32>
    %16 = arith.mulf %14, %15 : vector<256x128xf32>
    %17 = arith.addf %13, %16 : vector<256x128xf32>
    %18 = arith.truncf %17 : vector<256x128xf32> to vector<256x128xbf16>
    %c0_4 = arith.constant 0 : index
    %c0_5 = arith.constant 0 : index
    %19 = vector.load %arg4[%c0_4, %c0_5] : memref<128x128xbf16, #tpu.memory_space<vmem>>, vector<128x128xbf16>
    %cst_6 = arith.constant dense<0.000000e+00> : vector<256x128xf32>
    %20 = tpu.matmul %18, %19, %cst_6 {dimension_numbers = #tpu.dot_dimension_numbers<[1], [0], [0], [1], [0, 0, 1, 1], [], []>} : vector<256x128xbf16>, vector<128x128xbf16>, vector<256x128xf32> -> vector<256x128xf32>
    %21 = arith.truncf %20 : vector<256x128xf32> to vector<256x128xbf16>
    %c0_7 = arith.constant 0 : index
    %c0_8 = arith.constant 0 : index
    %22 = vector.load %arg9[%c0_7, %c0_8] : memref<128x128xf32, #tpu.memory_space<vmem>>, vector<128x128xf32>
    %c0_9 = arith.constant 0 : index
    %c0_10 = arith.constant 0 : index
    %23 = vector.load %arg2[%c0_9, %c0_10] : memref<128x256xbf16, #tpu.memory_space<vmem>>, vector<128x256xbf16>
    %cst_11 = arith.constant dense<0.000000e+00> : vector<128x128xf32>
    %24 = tpu.matmul %23, %21, %cst_11 {dimension_numbers = #tpu.dot_dimension_numbers<[1], [0], [0], [1], [0, 0, 1, 1], [], []>} : vector<128x256xbf16>, vector<256x128xbf16>, vector<128x128xf32> -> vector<128x128xf32>
    %25 = arith.addf %22, %24 : vector<128x128xf32>
    %c0_12 = arith.constant 0 : index
    %c0_13 = arith.constant 0 : index
    %26 = vector.load %arg9[%c0_12, %c0_13] : memref<128x128xf32, #tpu.memory_space<vmem>>, vector<128x128xf32>
    tpu.vector_store %arg9[%c0_12, %c0_13], %25 {strides = array<i32>} : memref<128x128xf32, #tpu.memory_space<vmem>>, vector<128x128xf32>,
    %c0_i32_14 = arith.constant 0 : i32
    %27 = arith.cmpi eq, %arg1, %c0_i32_14 : i32
    %28 = arith.extui %27 : i1 to i32
    %c0_i32_15 = arith.constant 0 : i32
    %29 = arith.cmpi ne, %28, %c0_i32_15 : i32
    scf.if %29 {
      %c0_16 = arith.constant 0 : index
      %c0_17 = arith.constant 0 : index
      %30 = vector.load %arg9[%c0_16, %c0_17] : memref<128x128xf32, #tpu.memory_space<vmem>>, vector<128x128xf32>
      %c0_18 = arith.constant 0 : index
      %c0_19 = arith.constant 0 : index
      %31 = vector.load %arg5[%c0_18, %c0_19] : memref<1x128xf32, #tpu.memory_space<vmem>>, vector<1x128xf32>
      %32 = vector.broadcast %31 : vector<1x128xf32> to vector<128x128xf32>
      %33 = arith.addf %30, %32 : vector<128x128xf32>
      %cst_20 = arith.constant 0.000000e+00 : f32
      %34 = vector.broadcast %cst_20 : f32 to vector<128x128xf32>
      %35 = arith.maximumf %33, %34 : vector<128x128xf32>
      %36 = arith.truncf %35 : vector<128x128xf32> to vector<128x128xbf16>
      %c0_21 = arith.constant 0 : index
      %c0_22 = arith.constant 0 : index
      %37 = vector.load %arg8[%c0_21, %c0_22] : memref<128x128xbf16, #tpu.memory_space<vmem>>, vector<128x128xbf16>
      tpu.vector_store %arg8[%c0_21, %c0_22], %36 {strides = array<i32>} : memref<128x128xbf16, #tpu.memory_space<vmem>>, vector<128x128xbf16>,
    } else {
    }
    return
  }
  func.func @transform_0(%arg0: i32, %arg1: i32) -> (i32, i32) {
    %c0_i32 = arith.constant 0 : i32
    return %arg0, %arg1 : i32, i32
  }
  func.func @transform_1(%arg0: i32, %arg1: i32) -> (i32, i32) {
    %c0_i32 = arith.constant 0 : i32
    %c0_i32_0 = arith.constant 0 : i32
    %c0_i32_1 = arith.constant 0 : i32
    return %c0_i32, %c0_i32_0 : i32, i32
  }
  func.func @transform_2(%arg0: i32, %arg1: i32) -> (i32, i32) {
    %c0_i32 = arith.constant 0 : i32
    %c0_i32_0 = arith.constant 0 : i32
    %c0_i32_1 = arith.constant 0 : i32
    return %c0_i32, %c0_i32_0 : i32, i32
  }
  func.func @transform_3(%arg0: i32, %arg1: i32) -> (i32, i32) {
    %c0_i32 = arith.constant 0 : i32
    %c0_i32_0 = arith.constant 0 : i32
    %c0_i32_1 = arith.constant 0 : i32
    return %c0_i32, %c0_i32_0 : i32, i32
  }
  func.func @transform_4(%arg0: i32, %arg1: i32) -> (i32, i32) {
    %c0_i32 = arith.constant 0 : i32
    %c0_i32_0 = arith.constant 0 : i32
    %c0_i32_1 = arith.constant 0 : i32
    return %c0_i32, %c0_i32_0 : i32, i32
  }
  func.func @transform_5(%arg0: i32, %arg1: i32) -> (i32, i32) {
    %c0_i32 = arith.constant 0 : i32
    %c0_i32_0 = arith.constant 0 : i32
    %c0_i32_1 = arith.constant 0 : i32
    return %c0_i32, %c0_i32_0 : i32, i32
  }
  func.func @transform_6(%arg0: i32, %arg1: i32) -> (i32, i32) {
    %c0_i32 = arith.constant 0 : i32
    %c0_i32_0 = arith.constant 0 : i32
    return %arg0, %c0_i32 : i32, i32
  }
}

</mosaic_0001>

<bundles_post_ra>
// kernel: tpu_custom_call.1
= control target key start
LH: loop header
LB: loop body
LE: loop exit
PB: predicated region body
PF: predicated region fallthrough
CT: control target
= control target key end

     0   :  { %11 = vsyncpa [#allocation4], 0  ;;  %s2552_s0 = inlined_call_operand.vmem [shape: bf16[256,256], index: 0, kind: input, shape index: {}]   ;;  %s2553_s1 = inlined_call_operand.hbm [shape: f32[256,128], index: 1, kind: input, shape index: {}]   ;;  %s2554_s2 = inlined_call_operand.hbm [shape: bf16[128,128], index: 2, kind: input, shape index: {}]   ;;  %s2555_s3 = inlined_call_operand.vmem [shape: f32[1,128], index: 3, kind: input, shape index: {}]   ;;  %s2556_s4 = inlined_call_operand.vmem [shape: f32[256,1], index: 4, kind: input, shape index: {}]   ;;  %s2557_s5 = inlined_call_operand.vmem [shape: f32[1,128], index: 5, kind: input, shape index: {}]   ;;  %s2558_s6 = inlined_call_operand.hbm [shape: bf16[256,128], index: 6, kind: output, shape index: {}]  }
   0x1   :  { %12 = vsyncpa [#allocation7], 0 }
   0x2   :  { %13 = vsyncpa [#allocation5], 0 }
   0x3   :  { %15 = vsyncpa [#allocation5 + $0x1], 0  ;;  %s2176_s21 = smov 0   ;;  %s2178_s22 = smov 0  }
   0x4   :  { %s2180_s23 = smov 0   ;;  %s2182_s24 = smov 0  }
   0x5   :  { %s2184_s25 = smov 0   ;;  %s2186_s26 = smov 0  }
   0x6 LB: > { %2565 = sst [smem:[#allocation12_spill]] %s2125_s25  ;;  %s1609_s27 = sadd.s32 4294967295, %s2129_s26   ;;  %s2129_s26 = sphi %s2186_s26, %s21_s26   ;;  %s2125_s25 = sphi %s2184_s25, %s2577_s25   ;;  %s2121_s24 = sphi %s2182_s24, %s2576_s24   ;;  %s2117_s23 = sphi %s2180_s23, %s2580_s23   ;;  %s2113_s22 = sphi %s2178_s22, %s2579_s22   ;;  %s2109_s21 = sphi %s2176_s21, %s2578_s21  }
   0x7   : > { %s1610_s28 = sadd.s32 4294967294, %s2129_s26   ;;  %s33_s29 = sadd.s32 1, %s2125_s25 }
   0x8   : > { %s173_s30 = sadd.s32 1, %s2117_s23  ;;  %p35_p0 = scmp.ge.s32.totalorder %s33_s29, 2 }
   0x9   : > { %p183_p1 = scmp.ne.s32.totalorder %s2117_s23, %s2113_s22  ;;  %p184_p2 = scmp.eq.s32.totalorder %s1609_s27, 1 }
   0xa   : > { %p189_p3 = scmp.ne.s32.totalorder %s2113_s22, %s2109_s21  ;;  %s2582_s29 = smov (%p35_p0, %s33_s29), 0 }
   0xb   : > { %2566 = sst [smem:[#allocation13_spill]] %s2582_s29  ;;  %p2216_p4 = por %p184_p2, %p183_p1 }
   0xc   : > { %p190_p5 = scmp.eq.s32.totalorder %s1610_s28, 1  ;;  %s170_s8 = ssub.s32 %s2125_s25, %s2582_s29 }
   0xd   : > { %s2567_s7 = scalar_select %p2216_p4, 1, 0 }
   0xe   : > { %p1611_p6 = scmp.ge.s32.totalorder %s2129_s26, 1  ;;  %p171_p7 = scmp.eq.s32.totalorder %s170_s8, 0 }
   0xf   : > { %p2223_p8 = por %p190_p5, %p189_p3  ;;  %p197_p9 = scmp.lt.s32.totalorder %s2129_s26, 3 }
  0x10   : > { %s2229_s10 = scalar_select %p171_p7, %s2117_s23, %s173_s30  }
  0x11   : > { %s2568_s9 = scalar_select %p2223_p8, 1, 0 }
  0x12   : > { %p2231_p10 = pnand %p1611_p6, %p197_p9  ;;  %p2235_p11 = scmp.eq.s32.totalorder %s1609_s27, 0 }
  0x13   : > { %s2131_s13 = smov [#allocation3]   ;;  %s2132_s16 = smov [#allocation6]  }
  0x14   : > { %s2569_s11 = scalar_select %p2231_p10, 1, 0 }
  0x15   : > { %s2570_s12 = scalar_select %p2235_p11, 1, 0 }
  0x16   : > { %p1880_p12 = pneg %p2231_p10  ;;  %s209_s14 = sshll.u32 %s2131_s13, 4  ;;  %s210_s14 = int_to_ptr.vmem [resolvable:$true] %s209_s14 }
  0x17   : > { %s222_s17 = sshll.u32 %s2132_s16, 4  ;;  %s1987_s20 = scalar_lea.hbm %s2553_s1, 4096  ;;  %s2247_s17 = int_to_ptr.vmem [resolvable:$true] %s222_s17 }
  0x18   : > { %p2243_p13 = pnand %p2235_p11, %p1880_p12  ;;  %p1988_p0 = scmp.ne.s32.totalorder %s2553_s1, %s1987_s20 }
  0x19   : > { %p1994_p5 = scmp.lt.u32.totalorder %s1987_s20, %s2553_s1 }
  0x1a   : > { %p1989_p1 = pneg %p2243_p13 }
  0x1c   : > { %p1990_p2 = pnand %p1989_p1, %p1988_p0 }
  0x1e   : > { %p1991_p3 = pneg %p1990_p2 }
  0x20   : > { %p1996_p6 = pnand %p1994_p5, %p1991_p3 }
  0x22   : > { %1999 = shalt.err (!%p1996_p6)
}
  0x23   : > { %s2000_s13 = scalar_lea.vmem %s210_s14, 4096  ;;  %p2008_p8 = scmp.lt.s32.totalorder %s210_s14, %s210_s14 }
  0x24   : > { %p2001_p7 = scmp.ne.s32.totalorder %s210_s14, %s2000_s13  ;;  %p2009_p4 = scmp.lt.s32.totalorder %s2000_s13, %s2000_s13 }
  0x26   : > { %p2003_p9 = pnand %p2001_p7, %p1989_p1  ;;  %p2010_p11 = por %p2009_p4, %p2008_p8 }
  0x28   : > { %p2004_p12 = pneg %p2003_p9 }
  0x2a   : > { %p2011_p10 = pnand %p2010_p11, %p2004_p12 }
  0x2c   : > { %2014 = shalt.err (!%p2011_p10)
}
  0x2d   : > { %s2133_s16 = smov 128   ;;  %s2134_s18 = smov 8  }
  0x2e   : > { %1883 = dma.hbm_to_vmem [thread:$0]  (!%p2243_p13), %s2553_s1, 4096, %s210_s14, [#allocation4], %s2133_s16, %s2133_s16, %s2134_s18  }
  0x2f   : > { %s2015_s30 = scalar_lea.hbm %s2554_s2, 1024 }
  0x30   : > { %p2016_p0 = scmp.ne.s32.totalorder %s2554_s2, %s2015_s30  ;;  %p2022_p10 = scmp.lt.u32.totalorder %s2015_s30, %s2554_s2 }
  0x32   : > { %p2018_p4 = pnand %p2016_p0, %p1989_p1 }
  0x34   : > { %p2019_p8 = pneg %p2018_p4 }
  0x36   : > { %p2024_p11 = pnand %p2022_p10, %p2019_p8 }
  0x38   : > { %2027 = shalt.err (!%p2024_p11)
}
  0x39   : > { %s2028_s14 = scalar_lea.vmem %s2247_s17, 1024  ;;  %p2036_p6 = scmp.lt.s32.totalorder %s2247_s17, %s2247_s17 }
  0x3a   : > { %p2029_p2 = scmp.ne.s32.totalorder %s2247_s17, %s2028_s14  ;;  %p2037_p7 = scmp.lt.s32.totalorder %s2028_s14, %s2028_s14 }
  0x3c   : > { %p2031_p3 = pnand %p2029_p2, %p1989_p1  ;;  %p2038_p9 = por %p2037_p7, %p2036_p6 }
  0x3e   : > { %p2032_p5 = pneg %p2031_p3 }
  0x40   : > { %p2039_p12 = pnand %p2038_p9, %p2032_p5 }
  0x42   : > { %2042 = shalt.err (!%p2039_p12)
}
  0x43   : > { %s2135_s25 = smov 64   ;;  %s2136_s29 = smov 4  }
  0x44   : > { %1886 = dma.hbm_to_vmem [thread:$0]  (!%p2243_p13), %s2554_s2, 1024, %s2247_s17, [#allocation7], %s2135_s25, %s2135_s25, %s2136_s29  }
  0x45   : > { %p2572_p0 = scmp.ne.s32.totalorder %s2569_s11, 0 }
  0x46   : > { %p2573_p1 = scmp.ne.s32.totalorder (!%p2572_p0), %s2570_s12, 0 }
  0x47   : > { %262 = sbr.rel (%p2572_p0) target bundleno = 861 (0x35d), region = 44 }
  0x4e   : > { %2096 = dma.done.wait (%p2573_p1), [#allocation4], 4096  }
  0x4f   : > { %2098 = vsyncadd (%p2573_p1), [#allocation4], 4294963200 }
  0x50   : > { %2100 = dma.done.wait (%p2573_p1), [#allocation7], 1024  }
  0x51   : > { %2102 = vsyncadd (%p2573_p1), [#allocation7], 4294966272  ;;  %v2137_v0 = vmov 0   ;;  %v370_v1 = vld [vmem:[%s2556_s4] sm:$0xff]  ;;  %v371_v2 = vld [vmem:[%s2556_s4 + $0x8] sm:$0xff]  ;;  %s1619_s11 = sshll.u32 %s2121_s24, 4 }
  0x52   : > { %1953 = vset.pattern.permute.xlu1 %v2137_v0  ;;  %1954 = vset.pattern.permute.xlu0 %v2137_v0  ;;  %v403_v3 = vsub.f32 1.0, %v370_v1  ;;  %v373_v4 = vld [vmem:[%s2556_s4 + $0x18] sm:$0xff]  ;;  %v404_v5 = vsub.f32 1.0, %v371_v2  ;;  %v372_v6 = vld [vmem:[%s2556_s4 + $0x10] sm:$0xff]  ;;  %v375_v9 = vld [vmem:[%s2556_s4 + $0x28] sm:$0xff]  ;;  %p303_p13 = scmp.lt.s32.totalorder %s1619_s11, 31 }
  0x53   : > { %629 = vperm.xlu1 %1953, %v370_v1   ;;  %v406_v7 = vsub.f32 1.0, %v373_v4  ;;  %v405_v8 = vsub.f32 1.0, %v372_v6  ;;  %v1955_v10 = vld [vmem:[#allocation6] sm:$0xff]   ;;  %v1956_v12 = vld [vmem:[#allocation6 + $0x8] sm:$0xff]   ;;  %v408_v13 = vsub.f32 1.0, %v375_v9  ;;  %v1957_v14 = vld [vmem:[#allocation6 + $0x10] sm:$0xff]  }
  0x54   : > { %437 = vperm.xlu0 %1954, %v403_v3   ;;  %v374_v11 = vld [vmem:[%s2556_s4 + $0x20] sm:$0xff]  ;;  %1822 = vmatprep.subr.bf16.mxu0 %v1955_v10  ;;  %v377_v16 = vld [vmem:[%s2556_s4 + $0x38] sm:$0xff]  ;;  %v376_v18 = vld [vmem:[%s2556_s4 + $0x30] sm:$0xff]  ;;  %s2584_s11 = smov (!%p303_p13, %s1619_s11), 31  ;;  %s298_s8 = sand.u32 1, %s2113_s22  }
  0x55   : > { %1823 = vmatpush3.bf16.msra.mxu0 %v1955_v10  ;;  %v407_v15 = vsub.f32 1.0, %v374_v11  ;;  %v1958_v17 = vld [vmem:[#allocation6 + $0x18] sm:$0xff]   ;;  %v410_v19 = vsub.f32 1.0, %v377_v16  ;;  %v1959_v20 = vld [vmem:[#allocation6 + $0x20] sm:$0xff]   ;;  %v409_v21 = vsub.f32 1.0, %v376_v18  ;;  %v379_v22 = vld [vmem:[%s2556_s4 + $0x48] sm:$0xff] }
  0x56   : > { %1824 = vmatprep.subr.bf16.mxu0 %v1956_v12  ;;  %v1960_v23 = vld [vmem:[#allocation6 + $0x28] sm:$0xff]   ;;  %v378_v24 = vld [vmem:[%s2556_s4 + $0x40] sm:$0xff]  ;;  %v412_v25 = vsub.f32 1.0, %v379_v22  ;;  %v1961_v26 = vld [vmem:[#allocation6 + $0x30] sm:$0xff]   ;;  %s1669_s19 = sshll.u32 %s2584_s11, 3  ;;  %s1618_s13 = sshll.u32 %s298_s8, 6 }
  0x57   : > { %634 = vperm.xlu1 %1953, %v371_v2   ;;  %v411_v27 = vsub.f32 1.0, %v378_v24  ;;  %v381_v28 = vld [vmem:[%s2556_s4 + $0x58] sm:$0xff]  ;;  %v380_v30 = vld [vmem:[%s2556_s4 + $0x50] sm:$0xff]  ;;  %v383_v33 = vld [vmem:[%s2556_s4 + $0x68] sm:$0xff]  ;;  %s2443_s12 = scalar_lea.vmem %s2552_s0, %s1669_s19  ;;  %s2471_s14 = scalar_lea.vmem [#allocation8], %s1618_s13 }
  0x58   : > { %442 = vperm.xlu0 %1954, %v404_v5   ;;  %v1962_v29 = vld [vmem:[#allocation6 + $0x38] sm:$0xff]   ;;  %v414_v31 = vsub.f32 1.0, %v381_v28  ;;  %v413_v32 = vsub.f32 1.0, %v380_v30  ;;  %v382_v34 = vld [vmem:[%s2556_s4 + $0x60] sm:$0xff]  ;;  %v416_v35 = vsub.f32 1.0, %v383_v33  ;;  %v384_v38 = vld [vmem:[%s2556_s4 + $0x70] sm:$0xff] }
  0x59   : > { %1825 = vmatpush3.bf16.msra.mxu0 %v1956_v12  ;;  %v415_v36 = vsub.f32 1.0, %v382_v34  ;;  %v385_v37 = vld [vmem:[%s2556_s4 + $0x78] sm:$0xff]  ;;  %v417_v40 = vsub.f32 1.0, %v384_v38  ;;  %v387_v41 = vld [vmem:[%s2556_s4 + $0x88] sm:$0xff]  ;;  %v386_v42 = vld [vmem:[%s2556_s4 + $0x80] sm:$0xff]  ;;  %s1686_s25 = sshll.u32 %s2121_s24, 10 }
  0x5a   : > { %1826 = vmatprep.subr.bf16.mxu0 %v1957_v14  ;;  %v418_v39 = vsub.f32 1.0, %v385_v37  ;;  %v420_v43 = vsub.f32 1.0, %v387_v41  ;;  %v419_v44 = vsub.f32 1.0, %v386_v42  ;;  %v389_v45 = vld [vmem:[%s2556_s4 + $0x98] sm:$0xff]  ;;  %v388_v46 = vld [vmem:[%s2556_s4 + $0x90] sm:$0xff]  ;;  %v391_v49 = vld [vmem:[%s2556_s4 + $0xa8] sm:$0xff]  ;;  %s2499_s15 = scalar_lea.hbm %s2558_s6, %s1686_s25 }
  0x5b   : > { %452 = vperm.xlu1 %1953, %v406_v7   ;;  %v422_v47 = vsub.f32 1.0, %v389_v45  ;;  %v421_v48 = vsub.f32 1.0, %v388_v46  ;;  %v390_v50 = vld [vmem:[%s2556_s4 + $0xa0] sm:$0xff]  ;;  %v424_v51 = vsub.f32 1.0, %v391_v49  ;;  %v393_v53 = vld [vmem:[%s2556_s4 + $0xb8] sm:$0xff]  ;;  %v392_v54 = vld [vmem:[%s2556_s4 + $0xb0] sm:$0xff] }
  0x5c   : > { %447 = vperm.xlu0 %1954, %v405_v8   ;;  %v423_v52 = vsub.f32 1.0, %v390_v50  ;;  %v426_v55 = vsub.f32 1.0, %v393_v53  ;;  %v425_v56 = vsub.f32 1.0, %v392_v54  ;;  %v395_v57 = vld [vmem:[%s2556_s4 + $0xc8] sm:$0xff]  ;;  %v394_v58 = vld [vmem:[%s2556_s4 + $0xc0] sm:$0xff]  ;;  %v397_v61 = vld [vmem:[%s2556_s4 + $0xd8] sm:$0xff] }
  0x5d   : > { %1827 = vmatpush3.bf16.msra.mxu0 %v1957_v14  ;;  %v428_v59 = vsub.f32 1.0, %v395_v57  ;;  %v427_v60 = vsub.f32 1.0, %v394_v58  ;;  %v396_v62 = vld [vmem:[%s2556_s4 + $0xd0] sm:$0xff]  ;;  %v430_v63 = vsub.f32 1.0, %v397_v61  ;;  %v399_v1 = vld [vmem:[%s2556_s4 + $0xe8] sm:$0xff]  ;;  %v398_v2 = vld [vmem:[%s2556_s4 + $0xe0] sm:$0xff] }
  0x5e   : > { %1828 = vmatprep.subr.bf16.mxu0 %v1958_v17  ;;  %v429_v0 = vsub.f32 1.0, %v396_v62  ;;  %v432_v3 = vsub.f32 1.0, %v399_v1  ;;  %v401_v5 = vld [vmem:[%s2556_s4 + $0xf8] sm:$0xff]  ;;  %v2405_v10 = vld [vmem:[%s2557_s5] ss:$0 sm:$0xff]  ;;  %v338_v14 = vld [vmem:[#allocation3 + $0x8] sm:$0xff] }
  0x5f   : > { %644 = vperm.xlu1 %1953, %v373_v4   ;;  %v431_v4 = vsub.f32 1.0, %v398_v2  ;;  %v434_v7 = vsub.f32 1.0, %v401_v5  ;;  %v337_v12 = vld [vmem:[#allocation3] sm:$0xff]  ;;  %s1507_s29 = sshll.u32 %s2471_s14, 4  ;;  %s2506_s17 = scalar_lea.sflag [#allocation5], %s298_s8  ;;  %s2501_s29 = int_to_ptr.vmem [resolvable:$true] %s1507_s29 }
  0x60   : > { %639 = vperm.xlu0 %1954, %v372_v6   ;;  %v400_v6 = vld [vmem:[%s2556_s4 + $0xf0] sm:$0xff]  ;;  %s2043_s11 = scalar_lea.vmem %s2501_s29, 1024  ;;  %p2574_p8 = scmp.ne.s32.totalorder %s2567_s7, 0 }
  0x61   : > { %1829 = vmatpush3.bf16.msra.mxu0 %v1958_v17  ;;  %v433_v8 = vsub.f32 1.0, %v400_v6  ;;  %p2044_p4 = scmp.ne.s32.totalorder %s2501_s29, %s2043_s11  ;;  %s2138_s24 = smov [#allocation8]  }
  0x62   : > { %1830 = vmatprep.subr.bf16.mxu0 %v1959_v20  ;;  %s2047_s19 = sshll.u32 %s2138_s24, 4  ;;  %s2048_s19 = int_to_ptr.vmem [resolvable:$false] %s2047_s19 }
  0x63   : > { %462 = vperm.xlu1 %1953, %v408_v13   ;;  %p2045_p10 = pnand %p2044_p4, %p2574_p8  ;;  %s2049_s20 = scalar_lea.vmem %s2048_s19, 2048 }
  0x64   : > { %457 = vperm.xlu0 %1954, %v407_v15   ;;  %p2050_p2 = scmp.lt.s32.totalorder %s2501_s29, %s2048_s19  ;;  %p2051_p3 = scmp.lt.s32.totalorder %s2049_s20, %s2043_s11 }
  0x65   : > { %1831 = vmatpush3.bf16.msra.mxu0 %v1959_v20  ;;  %p2046_p11 = pneg %p2045_p10 }
  0x66   : > { %1832 = vmatprep.subr.bf16.mxu0 %v1960_v23  ;;  %p2052_p5 = por %p2051_p3, %p2050_p2 }
  0x67   : > { %654 = vperm.xlu1 %1953, %v375_v9  }
  0x68   : > { %649 = vperm.xlu0 %1954, %v374_v11   ;;  %p2053_p6 = pnand %p2052_p5, %p2046_p11 }
  0x69   : > { %1833 = vmatpush3.bf16.msra.mxu0 %v1960_v23 }
  0x6a   : > { %1834 = vmatprep.subr.bf16.mxu0 %v1961_v26 }
  0x6b   : > { %472 = vperm.xlu1 %1953, %v410_v19  }
  0x6c   : > { %467 = vperm.xlu0 %1954, %v409_v21  }
  0x6d   : > { %1835 = vmatpush3.bf16.msra.mxu0 %v1961_v26  ;;  %v339_v26 = vld [vmem:[#allocation3 + $0x10] sm:$0xff] }
  0x6e   : > { %1836 = vmatprep.subr.bf16.mxu0 %v1962_v29 }
  0x6f   : > { %664 = vperm.xlu1 %1953, %v377_v16  }
  0x70   : > { %659 = vperm.xlu0 %1954, %v376_v18  }
  0x71   : > { %1837 = vmatpush3.bf16.msra.mxu0 %v1962_v29 }
  0x73   : > { %482 = vperm.xlu1 %1953, %v412_v25   ;;  %v340_v25 = vld [vmem:[#allocation3 + $0x18] sm:$0xff] }
  0x74   : > { %477 = vperm.xlu0 %1954, %v411_v27  }
  0x77   : > { %674 = vperm.xlu1 %1953, %v379_v22  }
  0x78   : > { %669 = vperm.xlu0 %1954, %v378_v24  }
  0x7b   : > { %492 = vperm.xlu1 %1953, %v414_v31  }
  0x7c   : > { %487 = vperm.xlu0 %1954, %v413_v32  }
  0x7f   : > { %684 = vperm.xlu1 %1953, %v381_v28  }
  0x80   : > { %679 = vperm.xlu0 %1954, %v380_v30  }
  0x83   : > { %502 = vperm.xlu1 %1953, %v416_v35  }
  0x84   : > { %497 = vperm.xlu0 %1954, %v415_v36  }
  0x87   : > { %694 = vperm.xlu1 %1953, %v383_v33  }
  0x88   : > { %689 = vperm.xlu0 %1954, %v382_v34  }
  0x8b   : > { %512 = vperm.xlu1 %1953, %v418_v39   ;;  %v341_v39 = vld [vmem:[#allocation3 + $0x20] sm:$0xff] }
  0x8c   : > { %507 = vperm.xlu0 %1954, %v417_v40  }
  0x8f   : > { %704 = vperm.xlu1 %1953, %v385_v37  }
  0x90   : > { %699 = vperm.xlu0 %1954, %v384_v38   ;;  %v342_v38 = vld [vmem:[#allocation3 + $0x28] sm:$0xff] }
  0x93   : > { %522 = vperm.xlu1 %1953, %v420_v43  }
  0x94   : > { %517 = vperm.xlu0 %1954, %v419_v44  }
  0x97   : > { %714 = vperm.xlu1 %1953, %v387_v41  }
  0x98   : > { %709 = vperm.xlu0 %1954, %v386_v42  }
  0x9b   : > { %532 = vperm.xlu1 %1953, %v422_v47  }
  0x9c   : > { %527 = vperm.xlu0 %1954, %v421_v48  }
  0x9f   : > { %724 = vperm.xlu1 %1953, %v389_v45  }
  0xa0   : > { %719 = vperm.xlu0 %1954, %v388_v46  }
  0xa3   : > { %542 = vperm.xlu1 %1953, %v424_v51   ;;  %v344_v51 = vld [vmem:[#allocation3 + $0x38] sm:$0xff] }
  0xa4   : > { %537 = vperm.xlu0 %1954, %v423_v52   ;;  %v343_v52 = vld [vmem:[#allocation3 + $0x30] sm:$0xff] }
  0xa7   : > { %734 = vperm.xlu1 %1953, %v391_v49  }
  0xa8   : > { %729 = vperm.xlu0 %1954, %v390_v50  }
  0xab   : > { %552 = vperm.xlu1 %1953, %v426_v55  }
  0xac   : > { %547 = vperm.xlu0 %1954, %v425_v56  }
  0xaf   : > { %744 = vperm.xlu1 %1953, %v393_v53  }
  0xb0   : > { %739 = vperm.xlu0 %1954, %v392_v54  }
  0xb3   : > { %562 = vperm.xlu1 %1953, %v428_v59  }
  0xb4   : > { %557 = vperm.xlu0 %1954, %v427_v60  }
  0xb7   : > { %754 = vperm.xlu1 %1953, %v395_v57  }
  0xb8   : > { %749 = vperm.xlu0 %1954, %v394_v58  }
  0xbb   : > { %572 = vperm.xlu1 %1953, %v430_v63  }
  0xbc   : > { %567 = vperm.xlu0 %1954, %v429_v0   ;;  %v346_v0 = vld [vmem:[#allocation3 + $0x48] sm:$0xff] }
  0xbf   : > { %764 = vperm.xlu1 %1953, %v397_v61  }
  0xc0   : > { %759 = vperm.xlu0 %1954, %v396_v62  }
  0xc3   : > { %582 = vperm.xlu1 %1953, %v432_v3  }
  0xc4   : > { %577 = vperm.xlu0 %1954, %v431_v4  }
  0xc7   : > { %774 = vperm.xlu1 %1953, %v399_v1   ;;  %v345_v1 = vld [vmem:[#allocation3 + $0x40] sm:$0xff] }
  0xc8   : > { %769 = vperm.xlu0 %1954, %v398_v2  }
  0xcb   : > { %592 = vperm.xlu1 %1953, %v434_v7  }
  0xcc   : > { %587 = vperm.xlu0 %1954, %v433_v8  }
  0xcf   : > { %784 = vperm.xlu1 %1953, %v401_v5  }
  0xd0   : > { %779 = vperm.xlu0 %1954, %v400_v6  }
  0xd2   : > { %v630_v9 = vpop.permute.xlu1 %629 }
  0xd3   : > { %v438_v11 = vpop.permute.xlu0 %437  ;;  %v793_v15 = vmul.f32 %v2405_v10, %v630_v9 }
  0xd4   : > { %v595_v16 = vmul.f32 %v438_v11, %v337_v12 }
  0xd6   : > { %v635_v13 = vpop.permute.xlu1 %634  ;;  %v825_v21 = vadd.f32 %v793_v15, %v595_v16  ;;  %v347_v15 = vld [vmem:[#allocation3 + $0x50] sm:$0xff] }
  0xd7   : > { %v443_v17 = vpop.permute.xlu0 %442  ;;  %v794_v18 = vmul.f32 %v2405_v10, %v635_v13 }
  0xd8   : > { %v596_v19 = vmul.f32 %v443_v17, %v338_v14  ;;  %v348_v14 = vld [vmem:[#allocation3 + $0x58] sm:$0xff] }
  0xda   : > { %v453_v20 = vpop.permute.xlu1 %452  ;;  %v826_v22 = vadd.f32 %v794_v18, %v596_v19 }
  0xdb   : > { %v448_v23 = vpop.permute.xlu0 %447  ;;  %v598_v30 = vmul.f32 %v453_v20, %v340_v25 }
  0xdc   : > { %v857_v24 = vpack.c.bf16 %v826_v22, %v825_v21  ;;  %v597_v31 = vmul.f32 %v448_v23, %v339_v26 }
  0xde   : > { %v645_v27 = vpop.permute.xlu1 %644  ;;  %1838 = vmatprep.mubr.bf16.mxu0 %v857_v24 }
  0xdf   : > { %v796_v28 = vmul.f32 %v2405_v10, %v645_v27  ;;  %v640_v29 = vpop.permute.xlu0 %639  ;;  %v350_v27 = vld [vmem:[#allocation3 + $0x68] sm:$0xff] }
  0xe0   : > { %v795_v32 = vmul.f32 %v2405_v10, %v640_v29 }
  0xe1   : > { %v828_v34 = vadd.f32 %v796_v28, %v598_v30  ;;  %v349_v28 = vld [vmem:[#allocation3 + $0x60] sm:$0xff] }
  0xe2   : > { %v463_v33 = vpop.permute.xlu1 %462  ;;  %v827_v35 = vadd.f32 %v795_v32, %v597_v31 }
  0xe3   : > { %v458_v36 = vpop.permute.xlu0 %457  ;;  %v600_v43 = vmul.f32 %v463_v33, %v342_v38 }
  0xe4   : > { %v858_v37 = vpack.c.bf16 %v828_v34, %v827_v35  ;;  %v599_v44 = vmul.f32 %v458_v36, %v341_v39 }
  0xe6   : > { %v655_v40 = vpop.permute.xlu1 %654  ;;  %1839 = vmatmul.mubr.bf16.vlgmr.msra.gmra.mrb[0].mxu0 %v858_v37 }
  0xe7   : > { %v798_v41 = vmul.f32 %v2405_v10, %v655_v40  ;;  %v650_v42 = vpop.permute.xlu0 %649  ;;  %v352_v40 = vld [vmem:[#allocation3 + $0x78] sm:$0xff] }
  0xe8   : > { %v797_v45 = vmul.f32 %v2405_v10, %v650_v42 }
  0xe9   : > { %v830_v47 = vadd.f32 %v798_v41, %v600_v43  ;;  %v351_v41 = vld [vmem:[#allocation3 + $0x70] sm:$0xff] }
  0xea   : > { %v473_v46 = vpop.permute.xlu1 %472  ;;  %v829_v48 = vadd.f32 %v797_v45, %v599_v44 }
  0xeb   : > { %v468_v49 = vpop.permute.xlu0 %467  ;;  %v602_v56 = vmul.f32 %v473_v46, %v344_v51 }
  0xec   : > { %v859_v50 = vpack.c.bf16 %v830_v47, %v829_v48  ;;  %v601_v57 = vmul.f32 %v468_v49, %v343_v52 }
  0xee   : > { %v665_v53 = vpop.permute.xlu1 %664  ;;  %1842 = vmatprep.mubr.bf16.mxu0 %v859_v50 }
  0xef   : > { %v800_v54 = vmul.f32 %v2405_v10, %v665_v53  ;;  %v660_v55 = vpop.permute.xlu0 %659  ;;  %v354_v53 = vld [vmem:[#allocation3 + $0x88] sm:$0xff] }
  0xf0   : > { %v799_v58 = vmul.f32 %v2405_v10, %v660_v55 }
  0xf1   : > { %v832_v60 = vadd.f32 %v800_v54, %v602_v56  ;;  %v353_v54 = vld [vmem:[#allocation3 + $0x80] sm:$0xff] }
  0xf2   : > { %v483_v59 = vpop.permute.xlu1 %482  ;;  %v831_v61 = vadd.f32 %v799_v58, %v601_v57 }
  0xf3   : > { %v478_v62 = vpop.permute.xlu0 %477  ;;  %v604_v5 = vmul.f32 %v483_v59, %v346_v0 }
  0xf4   : > { %v860_v63 = vpack.c.bf16 %v832_v60, %v831_v61  ;;  %v603_v6 = vmul.f32 %v478_v62, %v345_v1 }
  0xf6   : > { %v675_v2 = vpop.permute.xlu1 %674  ;;  %1843 = vmatmul.mubr.bf16.gmra.mrb[4].mxu0 %v860_v63 }
  0xf7   : > { %v802_v3 = vmul.f32 %v2405_v10, %v675_v2  ;;  %v670_v4 = vpop.permute.xlu0 %669  ;;  %v356_v2 = vld [vmem:[#allocation3 + $0x98] sm:$0xff] }
  0xf8   : > { %v801_v7 = vmul.f32 %v2405_v10, %v670_v4 }
  0xf9   : > { %v834_v9 = vadd.f32 %v802_v3, %v604_v5  ;;  %v355_v3 = vld [vmem:[#allocation3 + $0x90] sm:$0xff] }
  0xfa   : > { %v493_v8 = vpop.permute.xlu1 %492  ;;  %v833_v11 = vadd.f32 %v801_v7, %v603_v6 }
  0xfb   : > { %v488_v12 = vpop.permute.xlu0 %487  ;;  %v606_v19 = vmul.f32 %v493_v8, %v348_v14 }
  0xfc   : > { %v861_v13 = vpack.c.bf16 %v834_v9, %v833_v11  ;;  %v605_v20 = vmul.f32 %v488_v12, %v347_v15 }
  0xfe   : > { %v685_v16 = vpop.permute.xlu1 %684  ;;  %1846 = vmatprep.mubr.bf16.mxu0 %v861_v13 }
  0xff   : > { %v804_v17 = vmul.f32 %v2405_v10, %v685_v16  ;;  %v680_v18 = vpop.permute.xlu0 %679  ;;  %v358_v16 = vld [vmem:[#allocation3 + $0xa8] sm:$0xff] }
 0x100   : > { %v803_v21 = vmul.f32 %v2405_v10, %v680_v18 }
 0x101   : > { %v836_v23 = vadd.f32 %v804_v17, %v606_v19  ;;  %v357_v17 = vld [vmem:[#allocation3 + $0xa0] sm:$0xff] }
 0x102   : > { %v503_v22 = vpop.permute.xlu1 %502  ;;  %v835_v24 = vadd.f32 %v803_v21, %v605_v20 }
 0x103   : > { %v498_v25 = vpop.permute.xlu0 %497  ;;  %v608_v32 = vmul.f32 %v503_v22, %v350_v27 }
 0x104   : > { %v862_v26 = vpack.c.bf16 %v836_v23, %v835_v24  ;;  %v607_v33 = vmul.f32 %v498_v25, %v349_v28 }
 0x106   : > { %v695_v29 = vpop.permute.xlu1 %694  ;;  %1847 = vmatmul.mubr.bf16.gmra.mrb[8].mxu0 %v862_v26 }
 0x107   : > { %v806_v30 = vmul.f32 %v2405_v10, %v695_v29  ;;  %v690_v31 = vpop.permute.xlu0 %689  ;;  %v360_v29 = vld [vmem:[#allocation3 + $0xb8] sm:$0xff] }
 0x108   : > { %v805_v34 = vmul.f32 %v2405_v10, %v690_v31 }
 0x109   : > { %v838_v36 = vadd.f32 %v806_v30, %v608_v32  ;;  %v359_v30 = vld [vmem:[#allocation3 + $0xb0] sm:$0xff] }
 0x10a   : > { %v513_v35 = vpop.permute.xlu1 %512  ;;  %v837_v37 = vadd.f32 %v805_v34, %v607_v33 }
 0x10b   : > { %v508_v38 = vpop.permute.xlu0 %507  ;;  %v610_v45 = vmul.f32 %v513_v35, %v352_v40 }
 0x10c   : > { %v863_v39 = vpack.c.bf16 %v838_v36, %v837_v37  ;;  %v609_v46 = vmul.f32 %v508_v38, %v351_v41 }
 0x10e   : > { %v705_v42 = vpop.permute.xlu1 %704  ;;  %1850 = vmatprep.mubr.bf16.mxu0 %v863_v39 }
 0x10f   : > { %v808_v43 = vmul.f32 %v2405_v10, %v705_v42  ;;  %v700_v44 = vpop.permute.xlu0 %699  ;;  %v362_v42 = vld [vmem:[#allocation3 + $0xc8] sm:$0xff] }
 0x110   : > { %v807_v47 = vmul.f32 %v2405_v10, %v700_v44 }
 0x111   : > { %v840_v49 = vadd.f32 %v808_v43, %v610_v45  ;;  %v361_v43 = vld [vmem:[#allocation3 + $0xc0] sm:$0xff] }
 0x112   : > { %v523_v48 = vpop.permute.xlu1 %522  ;;  %v839_v50 = vadd.f32 %v807_v47, %v609_v46 }
 0x113   : > { %v518_v51 = vpop.permute.xlu0 %517  ;;  %v612_v58 = vmul.f32 %v523_v48, %v354_v53 }
 0x114   : > { %v864_v52 = vpack.c.bf16 %v840_v49, %v839_v50  ;;  %v611_v59 = vmul.f32 %v518_v51, %v353_v54 }
 0x116   : > { %v715_v55 = vpop.permute.xlu1 %714  ;;  %1851 = vmatmul.mubr.bf16.gmra.mrb[12].mxu0 %v864_v52 }
 0x117   : > { %v810_v56 = vmul.f32 %v2405_v10, %v715_v55  ;;  %v710_v57 = vpop.permute.xlu0 %709  ;;  %v364_v55 = vld [vmem:[#allocation3 + $0xd8] sm:$0xff] }
 0x118   : > { %v809_v60 = vmul.f32 %v2405_v10, %v710_v57 }
 0x119   : > { %v842_v62 = vadd.f32 %v810_v56, %v612_v58  ;;  %v363_v56 = vld [vmem:[#allocation3 + $0xd0] sm:$0xff] }
 0x11a   : > { %v533_v61 = vpop.permute.xlu1 %532  ;;  %v841_v63 = vadd.f32 %v809_v60, %v611_v59 }
 0x11b   : > { %v528_v0 = vpop.permute.xlu0 %527  ;;  %v614_v7 = vmul.f32 %v533_v61, %v356_v2 }
 0x11c   : > { %v865_v1 = vpack.c.bf16 %v842_v62, %v841_v63  ;;  %v613_v8 = vmul.f32 %v528_v0, %v355_v3 }
 0x11e   : > { %v725_v4 = vpop.permute.xlu1 %724  ;;  %1854 = vmatprep.mubr.bf16.mxu0 %v865_v1 }
 0x11f   : > { %v812_v5 = vmul.f32 %v2405_v10, %v725_v4  ;;  %v720_v6 = vpop.permute.xlu0 %719  ;;  %v366_v4 = vld [vmem:[#allocation3 + $0xe8] sm:$0xff] }
 0x120   : > { %v811_v9 = vmul.f32 %v2405_v10, %v720_v6 }
 0x121   : > { %v844_v12 = vadd.f32 %v812_v5, %v614_v7  ;;  %v365_v5 = vld [vmem:[#allocation3 + $0xe0] sm:$0xff] }
 0x122   : > { %v543_v11 = vpop.permute.xlu1 %542  ;;  %v843_v13 = vadd.f32 %v811_v9, %v613_v8 }
 0x123   : > { %v538_v14 = vpop.permute.xlu0 %537  ;;  %v616_v21 = vmul.f32 %v543_v11, %v358_v16 }
 0x124   : > { %v866_v15 = vpack.c.bf16 %v844_v12, %v843_v13  ;;  %v615_v22 = vmul.f32 %v538_v14, %v357_v17 }
 0x126   : > { %v735_v18 = vpop.permute.xlu1 %734  ;;  %1855 = vmatmul.mubr.bf16.gmra.mrb[16].mxu0 %v866_v15 }
 0x127   : > { %v814_v19 = vmul.f32 %v2405_v10, %v735_v18  ;;  %v730_v20 = vpop.permute.xlu0 %729  ;;  %v368_v18 = vld [vmem:[#allocation3 + $0xf8] sm:$0xff] }
 0x128   : > { %v813_v23 = vmul.f32 %v2405_v10, %v730_v20 }
 0x129   : > { %v846_v25 = vadd.f32 %v814_v19, %v616_v21  ;;  %v367_v19 = vld [vmem:[#allocation3 + $0xf0] sm:$0xff] }
 0x12a   : > { %v553_v24 = vpop.permute.xlu1 %552  ;;  %v845_v26 = vadd.f32 %v813_v23, %v615_v22 }
 0x12b   : > { %v548_v27 = vpop.permute.xlu0 %547  ;;  %v618_v34 = vmul.f32 %v553_v24, %v360_v29  ;;  %v1965_v29 = vld [vmem:[%s2443_s12 + $0x4] ss:$8 sps:$4 sm:$0xff]  }
 0x12c   : > { %v867_v28 = vpack.c.bf16 %v846_v25, %v845_v26  ;;  %v617_v35 = vmul.f32 %v548_v27, %v359_v30  ;;  %1258 = vmatprep.mubr.bf16.mxu1 %v1965_v29 }
 0x12e   : > { %v745_v31 = vpop.permute.xlu1 %744  ;;  %1858 = vmatprep.mubr.bf16.mxu0 %v867_v28 }
 0x12f   : > { %v816_v32 = vmul.f32 %v2405_v10, %v745_v31  ;;  %v740_v33 = vpop.permute.xlu0 %739 }
 0x130   : > { %v815_v36 = vmul.f32 %v2405_v10, %v740_v33 }
 0x131   : > { %v848_v38 = vadd.f32 %v816_v32, %v618_v34 }
 0x132   : > { %v563_v37 = vpop.permute.xlu1 %562  ;;  %v847_v39 = vadd.f32 %v815_v36, %v617_v35 }
 0x133   : > { %v558_v40 = vpop.permute.xlu0 %557  ;;  %v620_v47 = vmul.f32 %v563_v37, %v362_v42 }
 0x134   : > { %v868_v41 = vpack.c.bf16 %v848_v38, %v847_v39  ;;  %v619_v48 = vmul.f32 %v558_v40, %v361_v43 }
 0x136   : > { %v755_v44 = vpop.permute.xlu1 %754  ;;  %1859 = vmatmul.mubr.bf16.gmra.mrb[20].mxu0 %v868_v41 }
 0x137   : > { %v818_v45 = vmul.f32 %v2405_v10, %v755_v44  ;;  %v750_v46 = vpop.permute.xlu0 %749 }
 0x138   : > { %v817_v49 = vmul.f32 %v2405_v10, %v750_v46 }
 0x139   : > { %v850_v51 = vadd.f32 %v818_v45, %v620_v47 }
 0x13a   : > { %v573_v50 = vpop.permute.xlu1 %572  ;;  %v849_v52 = vadd.f32 %v817_v49, %v619_v48 }
 0x13b   : > { %v568_v53 = vpop.permute.xlu0 %567  ;;  %v622_v60 = vmul.f32 %v573_v50, %v364_v55 }
 0x13c   : > { %v869_v54 = vpack.c.bf16 %v850_v51, %v849_v52  ;;  %v621_v61 = vmul.f32 %v568_v53, %v363_v56 }
 0x13e   : > { %v765_v57 = vpop.permute.xlu1 %764  ;;  %1862 = vmatprep.mubr.bf16.mxu0 %v869_v54 }
 0x13f   : > { %v820_v58 = vmul.f32 %v2405_v10, %v765_v57  ;;  %v760_v59 = vpop.permute.xlu0 %759 }
 0x140   : > { %v819_v62 = vmul.f32 %v2405_v10, %v760_v59 }
 0x141   : > { %v852_v0 = vadd.f32 %v820_v58, %v622_v60 }
 0x142   : > { %v583_v63 = vpop.permute.xlu1 %582  ;;  %v851_v1 = vadd.f32 %v819_v62, %v621_v61 }
 0x143   : > { %v578_v2 = vpop.permute.xlu0 %577  ;;  %v624_v9 = vmul.f32 %v583_v63, %v366_v4 }
 0x144   : > { %v870_v3 = vpack.c.bf16 %v852_v0, %v851_v1  ;;  %v623_v11 = vmul.f32 %v578_v2, %v365_v5 }
 0x146   : > { %v775_v6 = vpop.permute.xlu1 %774  ;;  %1863 = vmatmul.mubr.bf16.gmra.mrb[24].mxu0 %v870_v3 }
 0x147   : > { %v822_v7 = vmul.f32 %v2405_v10, %v775_v6  ;;  %v770_v8 = vpop.permute.xlu0 %769 }
 0x148   : > { %v821_v12 = vmul.f32 %v2405_v10, %v770_v8 }
 0x149   : > { %v854_v14 = vadd.f32 %v822_v7, %v624_v9 }
 0x14a   : > { %v593_v13 = vpop.permute.xlu1 %592  ;;  %v853_v15 = vadd.f32 %v821_v12, %v623_v11 }
 0x14b   : > { %v588_v16 = vpop.permute.xlu0 %587  ;;  %v626_v23 = vmul.f32 %v593_v13, %v368_v18  ;;  %v1971_v18 = vld [vmem:[%s2443_s12 + $0x20] ss:$8 sps:$4 sm:$0xff]  }
 0x14c   : > { %v871_v17 = vpack.c.bf16 %v854_v14, %v853_v15  ;;  %v625_v24 = vmul.f32 %v588_v16, %v367_v19  ;;  %v1963_v14 = vld [vmem:[%s2443_s12] ss:$8 sps:$4 sm:$0xff]   ;;  %v1966_v15 = vld [vmem:[%s2443_s12 + $0x14] ss:$8 sps:$4 sm:$0xff]   ;;  %v1968_v16 = vld [vmem:[%s2443_s12 + $0x10] ss:$8 sps:$4 sm:$0xff]  }
 0x14d   : > { %v1972_v19 = vld [vmem:[%s2443_s12 + $0x34] ss:$8 sps:$4 sm:$0xff]  }
 0x14e   : > { %v785_v20 = vpop.permute.xlu1 %784  ;;  %1866 = vmatprep.mubr.bf16.mxu0 %v871_v17  ;;  %v1969_v17 = vld [vmem:[%s2443_s12 + $0x24] ss:$8 sps:$4 sm:$0xff]  }
 0x14f   : > { %v824_v21 = vmul.f32 %v2405_v10, %v785_v20  ;;  %v780_v22 = vpop.permute.xlu0 %779  ;;  %v1974_v20 = vld [vmem:[%s2443_s12 + $0x30] ss:$8 sps:$4 sm:$0xff]  }
 0x150   : > { %v823_v25 = vmul.f32 %v2405_v10, %v780_v22  ;;  %v1977_v22 = vld [vmem:[%s2443_s12 + $0x40] ss:$8 sps:$4 sm:$0xff]  }
 0x151   : > { %v856_v26 = vadd.f32 %v824_v21, %v626_v23  ;;  %v1975_v21 = vld [vmem:[%s2443_s12 + $0x44] ss:$8 sps:$4 sm:$0xff]   ;;  %v1978_v23 = vld [vmem:[%s2443_s12 + $0x54] ss:$8 sps:$4 sm:$0xff]  }
 0x152   : > { %v855_v27 = vadd.f32 %v823_v25, %v625_v24  ;;  %v1980_v24 = vld [vmem:[%s2443_s12 + $0x50] ss:$8 sps:$4 sm:$0xff]   ;;  %v1981_v25 = vld [vmem:[%s2443_s12 + $0x64] ss:$8 sps:$4 sm:$0xff]  }
 0x154   : > { %v872_v28 = vpack.c.bf16 %v856_v26, %v855_v27  ;;  %v1983_v26 = vld [vmem:[%s2443_s12 + $0x60] ss:$8 sps:$4 sm:$0xff]   ;;  %v1984_v27 = vld [vmem:[%s2443_s12 + $0x74] ss:$8 sps:$4 sm:$0xff]  }
 0x156   : > { %1867 = vmatmul.mubr.bf16.gmra.mrb[28].mxu0 %v872_v28  ;;  %v1986_v28 = vld [vmem:[%s2443_s12 + $0x70] ss:$8 sps:$4 sm:$0xff]  }
 0x1b9   : > { %v1840_v30 = vpop.f32.mrb[0].mxu0 }
 0x1ba   : > { %v971_v31 = vpop.f32.mrb[1].mxu0 }
 0x1bb   : > { %v1841_v32 = vpop.f32.mrb[2].mxu0 }
 0x1bc   : > { %v1099_v10 = vpack.c.bf16 %v1841_v32, %v1840_v30  ;;  %v974_v33 = vpop.f32.mrb[3].mxu0 }
 0x1bd   : > { %v1098_v34 = vpack.c.bf16 %v974_v33, %v971_v31  ;;  %v2464_v31 = vld [vmem:[%s2555_s3] ss:$0 sm:$0xff] }
 0x1c9   : > { %v1844_v35 = vpop.f32.mrb[4].mxu0 }
 0x1ca   : > { %v987_v36 = vpop.f32.mrb[5].mxu0 }
 0x1cb   : > { %v1845_v37 = vpop.f32.mrb[6].mxu0 }
 0x1cc   : > { %v1101_v38 = vpack.c.bf16 %v1845_v37, %v1844_v35  ;;  %v990_v39 = vpop.f32.mrb[7].mxu0 }
 0x1cd   : > { %v1100_v40 = vpack.c.bf16 %v990_v39, %v987_v36 }
 0x1d9   : > { %v1848_v41 = vpop.f32.mrb[8].mxu0 }
 0x1da   : > { %v1003_v42 = vpop.f32.mrb[9].mxu0 }
 0x1db   : > { %v1849_v43 = vpop.f32.mrb[10].mxu0 }
 0x1dc   : > { %v1103_v44 = vpack.c.bf16 %v1849_v43, %v1848_v41  ;;  %v1006_v45 = vpop.f32.mrb[11].mxu0 }
 0x1dd   : > { %v1102_v46 = vpack.c.bf16 %v1006_v45, %v1003_v42 }
 0x1e9   : > { %v1852_v47 = vpop.f32.mrb[12].mxu0 }
 0x1ea   : > { %v1019_v48 = vpop.f32.mrb[13].mxu0 }
 0x1eb   : > { %v1853_v49 = vpop.f32.mrb[14].mxu0 }
 0x1ec   : > { %v1105_v50 = vpack.c.bf16 %v1853_v49, %v1852_v47  ;;  %v1022_v51 = vpop.f32.mrb[15].mxu0 }
 0x1ed   : > { %v1104_v52 = vpack.c.bf16 %v1022_v51, %v1019_v48 }
 0x1f9   : > { %v1856_v53 = vpop.f32.mrb[16].mxu0 }
 0x1fa   : > { %v1035_v54 = vpop.f32.mrb[17].mxu0 }
 0x1fb   : > { %v1857_v55 = vpop.f32.mrb[18].mxu0 }
 0x1fc   : > { %v1107_v56 = vpack.c.bf16 %v1857_v55, %v1856_v53  ;;  %v1038_v57 = vpop.f32.mrb[19].mxu0 }
 0x1fd   : > { %v1106_v58 = vpack.c.bf16 %v1038_v57, %v1035_v54 }
 0x1ff   : > { %1758 = vmatprep.subr.bf16.mxu1 %v1106_v58 }
 0x200   : > { %1759 = vmatpush3.bf16.msra.mxu1 %v1098_v34 }
 0x201   : > { %1760 = vmatprep.subr.bf16.mxu1 %v1107_v56 }
 0x204   : > { %1761 = vmatpush3.bf16.msra.mxu1 %v1099_v10 }
 0x209   : > { %v1860_v59 = vpop.f32.mrb[20].mxu0 }
 0x20a   : > { %v1051_v60 = vpop.f32.mrb[21].mxu0 }
 0x20b   : > { %v1861_v61 = vpop.f32.mrb[22].mxu0 }
 0x20c   : > { %v1109_v62 = vpack.c.bf16 %v1861_v61, %v1860_v59  ;;  %v1054_v63 = vpop.f32.mrb[23].mxu0 }
 0x20d   : > { %v1108_v0 = vpack.c.bf16 %v1054_v63, %v1051_v60 }
 0x20f   : > { %1762 = vmatprep.subr.bf16.mxu1 %v1108_v0 }
 0x210   : > { %1763 = vmatpush3.bf16.msra.mxu1 %v1100_v40 }
 0x211   : > { %1764 = vmatprep.subr.bf16.mxu1 %v1109_v62 }
 0x214   : > { %1765 = vmatpush3.bf16.msra.mxu1 %v1101_v38 }
 0x219   : > { %v1864_v1 = vpop.f32.mrb[24].mxu0 }
 0x21a   : > { %v1067_v2 = vpop.f32.mrb[25].mxu0 }
 0x21b   : > { %v1865_v3 = vpop.f32.mrb[26].mxu0 }
 0x21c   : > { %v1111_v4 = vpack.c.bf16 %v1865_v3, %v1864_v1  ;;  %v1070_v5 = vpop.f32.mrb[27].mxu0 }
 0x21d   : > { %v1110_v6 = vpack.c.bf16 %v1070_v5, %v1067_v2 }
 0x21f   : > { %1766 = vmatprep.subr.bf16.mxu1 %v1110_v6 }
 0x220   : > { %1767 = vmatpush3.bf16.msra.mxu1 %v1102_v46 }
 0x221   : > { %1768 = vmatprep.subr.bf16.mxu1 %v1111_v4 }
 0x224   : > { %1769 = vmatpush3.bf16.msra.mxu1 %v1103_v44 }
 0x229   : > { %v1868_v7 = vpop.f32.mrb[28].mxu0 }
 0x22a   : > { %v1083_v8 = vpop.f32.mrb[29].mxu0 }
 0x22b   : > { %v1869_v9 = vpop.f32.mrb[30].mxu0 }
 0x22c   : > { %v1113_v11 = vpack.c.bf16 %v1869_v9, %v1868_v7  ;;  %v1086_v12 = vpop.f32.mrb[31].mxu0 }
 0x22d   : > { %v1112_v13 = vpack.c.bf16 %v1086_v12, %v1083_v8 }
 0x22f   : > { %1770 = vmatprep.subr.bf16.mxu1 %v1112_v13 }
 0x230   : > { %1771 = vmatpush3.bf16.msra.mxu1 %v1104_v52 }
 0x231   : > { %1772 = vmatprep.subr.bf16.mxu1 %v1113_v11 }
 0x234   : > { %1773 = vmatpush3.bf16.msra.mxu1 %v1105_v50 }
 0x237   : > { %1259 = vmatmul.mubr.bf16.vlgmr.msra.gmra.mrb[0].mxu1 %v1963_v14 }
 0x238   : > { %1266 = vmatprep.mubr.bf16.mxu1 %v1966_v15 }
 0x23f   : > { %1267 = vmatmul.mubr.bf16.gmra.mrb[4].mxu1 %v1968_v16 }
 0x240   : > { %1274 = vmatprep.mubr.bf16.mxu1 %v1969_v17 }
 0x247   : > { %1275 = vmatmul.mubr.bf16.gmra.mrb[8].mxu1 %v1971_v18 }
 0x248   : > { %1282 = vmatprep.mubr.bf16.mxu1 %v1972_v19 }
 0x24f   : > { %1283 = vmatmul.mubr.bf16.gmra.mrb[12].mxu1 %v1974_v20 }
 0x250   : > { %1290 = vmatprep.mubr.bf16.mxu1 %v1975_v21 }
 0x257   : > { %1291 = vmatmul.mubr.bf16.gmra.mrb[16].mxu1 %v1977_v22 }
 0x258   : > { %1298 = vmatprep.mubr.bf16.mxu1 %v1978_v23 }
 0x25f   : > { %1299 = vmatmul.mubr.bf16.gmra.mrb[20].mxu1 %v1980_v24 }
 0x260   : > { %1306 = vmatprep.mubr.bf16.mxu1 %v1981_v25 }
 0x267   : > { %1307 = vmatmul.mubr.bf16.gmra.mrb[24].mxu1 %v1983_v26 }
 0x268   : > { %1314 = vmatprep.mubr.bf16.mxu1 %v1984_v27 }
 0x26f   : > { %1315 = vmatmul.mubr.bf16.gmra.mrb[28].mxu1 %v1986_v28 }
 0x30a   : > { %v1774_v29 = vpop.f32.mrb[0].mxu1 }
 0x30b   : > { %v1775_v30 = vpop.f32.mrb[1].mxu1 }
 0x30c   : > { %v1776_v32 = vadd.f32 %v1775_v30, %v1774_v29  ;;  %v1777_v10 = vpop.f32.mrb[2].mxu1 }
 0x30d   : > { %v1778_v33 = vpop.f32.mrb[3].mxu1 }
 0x30e   : > { %v1381_v34 = vadd.f32 %v1776_v32, %v2464_v31  ;;  %v1779_v35 = vadd.f32 %v1778_v33, %v1777_v10 }
 0x310   : > { %v1382_v36 = vadd.f32 %v1779_v35, %v2464_v31  ;;  %v1397_v37 = vmax.f32 %v1381_v34, 0.0 }
 0x312   : > { %v1398_v38 = vmax.f32 %v1382_v36, 0.0  ;;  %v1780_v39 = vpop.f32.mrb[4].mxu1 }
 0x313   : > { %v1781_v40 = vpop.f32.mrb[5].mxu1 }
 0x314   : > { %v1690_v41 = vpack.c.bf16 %v1398_v38, %v1397_v37  ;;  %v1782_v42 = vadd.f32 %v1781_v40, %v1780_v39  ;;  %v1783_v43 = vpop.f32.mrb[6].mxu1 }
 0x315   : > { %v1784_v44 = vpop.f32.mrb[7].mxu1 }
 0x316   : > { %1691 = vst [vmem:[%s2471_s14] sm:$0xff] %v1690_v41   ;;  %v1383_v45 = vadd.f32 %v1782_v42, %v2464_v31  ;;  %v1785_v46 = vadd.f32 %v1784_v44, %v1783_v43 }
 0x318   : > { %v1384_v47 = vadd.f32 %v1785_v46, %v2464_v31  ;;  %v1399_v48 = vmax.f32 %v1383_v45, 0.0 }
 0x31a   : > { %v1400_v49 = vmax.f32 %v1384_v47, 0.0  ;;  %v1786_v50 = vpop.f32.mrb[8].mxu1 }
 0x31b   : > { %v1787_v51 = vpop.f32.mrb[9].mxu1 }
 0x31c   : > { %v1695_v52 = vpack.c.bf16 %v1400_v49, %v1399_v48  ;;  %v1788_v53 = vadd.f32 %v1787_v51, %v1786_v50  ;;  %v1789_v54 = vpop.f32.mrb[10].mxu1 }
 0x31d   : > { %v1790_v55 = vpop.f32.mrb[11].mxu1 }
 0x31e   : > { %1727 = vst [vmem:[%s2471_s14 + $0x8] sm:$0xff] %v1695_v52   ;;  %v1385_v56 = vadd.f32 %v1788_v53, %v2464_v31  ;;  %v1791_v57 = vadd.f32 %v1790_v55, %v1789_v54 }
 0x320   : > { %v1386_v58 = vadd.f32 %v1791_v57, %v2464_v31  ;;  %v1401_v59 = vmax.f32 %v1385_v56, 0.0 }
 0x322   : > { %v1402_v60 = vmax.f32 %v1386_v58, 0.0  ;;  %v1792_v61 = vpop.f32.mrb[12].mxu1 }
 0x323   : > { %v1793_v62 = vpop.f32.mrb[13].mxu1 }
 0x324   : > { %v1700_v63 = vpack.c.bf16 %v1402_v60, %v1401_v59  ;;  %v1794_v0 = vadd.f32 %v1793_v62, %v1792_v61  ;;  %v1795_v1 = vpop.f32.mrb[14].mxu1 }
 0x325   : > { %v1796_v2 = vpop.f32.mrb[15].mxu1 }
 0x326   : > { %1728 = vst [vmem:[%s2471_s14 + $0x10] sm:$0xff] %v1700_v63   ;;  %v1387_v3 = vadd.f32 %v1794_v0, %v2464_v31  ;;  %v1797_v4 = vadd.f32 %v1796_v2, %v1795_v1 }
 0x328   : > { %v1388_v5 = vadd.f32 %v1797_v4, %v2464_v31  ;;  %v1403_v6 = vmax.f32 %v1387_v3, 0.0 }
 0x32a   : > { %v1404_v7 = vmax.f32 %v1388_v5, 0.0  ;;  %v1798_v8 = vpop.f32.mrb[16].mxu1 }
 0x32b   : > { %v1799_v9 = vpop.f32.mrb[17].mxu1 }
 0x32c   : > { %v1705_v11 = vpack.c.bf16 %v1404_v7, %v1403_v6  ;;  %v1800_v12 = vadd.f32 %v1799_v9, %v1798_v8  ;;  %v1801_v13 = vpop.f32.mrb[18].mxu1 }
 0x32d   : > { %v1802_v14 = vpop.f32.mrb[19].mxu1 }
 0x32e   : > { %1729 = vst [vmem:[%s2471_s14 + $0x18] sm:$0xff] %v1705_v11   ;;  %v1389_v15 = vadd.f32 %v1800_v12, %v2464_v31  ;;  %v1803_v16 = vadd.f32 %v1802_v14, %v1801_v13 }
 0x330   : > { %v1390_v17 = vadd.f32 %v1803_v16, %v2464_v31  ;;  %v1405_v18 = vmax.f32 %v1389_v15, 0.0 }
 0x332   : > { %v1406_v19 = vmax.f32 %v1390_v17, 0.0  ;;  %v1804_v20 = vpop.f32.mrb[20].mxu1 }
 0x333   : > { %v1805_v21 = vpop.f32.mrb[21].mxu1 }
 0x334   : > { %v1710_v22 = vpack.c.bf16 %v1406_v19, %v1405_v18  ;;  %v1806_v23 = vadd.f32 %v1805_v21, %v1804_v20  ;;  %v1807_v24 = vpop.f32.mrb[22].mxu1 }
 0x335   : > { %v1808_v25 = vpop.f32.mrb[23].mxu1 }
 0x336   : > { %1730 = vst [vmem:[%s2471_s14 + $0x20] sm:$0xff] %v1710_v22   ;;  %v1391_v26 = vadd.f32 %v1806_v23, %v2464_v31  ;;  %v1809_v27 = vadd.f32 %v1808_v25, %v1807_v24 }
 0x338   : > { %v1392_v28 = vadd.f32 %v1809_v27, %v2464_v31  ;;  %v1407_v29 = vmax.f32 %v1391_v26, 0.0 }
 0x33a   : > { %v1408_v30 = vmax.f32 %v1392_v28, 0.0  ;;  %v1810_v32 = vpop.f32.mrb[24].mxu1 }
 0x33b   : > { %v1811_v10 = vpop.f32.mrb[25].mxu1 }
 0x33c   : > { %v1715_v33 = vpack.c.bf16 %v1408_v30, %v1407_v29  ;;  %v1812_v34 = vadd.f32 %v1811_v10, %v1810_v32  ;;  %v1813_v35 = vpop.f32.mrb[26].mxu1 }
 0x33d   : > { %v1814_v36 = vpop.f32.mrb[27].mxu1 }
 0x33e   : > { %1731 = vst [vmem:[%s2471_s14 + $0x28] sm:$0xff] %v1715_v33   ;;  %v1393_v37 = vadd.f32 %v1812_v34, %v2464_v31  ;;  %v1815_v38 = vadd.f32 %v1814_v36, %v1813_v35 }
 0x340   : > { %v1394_v39 = vadd.f32 %v1815_v38, %v2464_v31  ;;  %v1409_v40 = vmax.f32 %v1393_v37, 0.0 }
 0x342   : > { %v1410_v41 = vmax.f32 %v1394_v39, 0.0  ;;  %v1816_v42 = vpop.f32.mrb[28].mxu1 }
 0x343   : > { %v1817_v43 = vpop.f32.mrb[29].mxu1 }
 0x344   : > { %v1720_v44 = vpack.c.bf16 %v1410_v41, %v1409_v40  ;;  %v1818_v45 = vadd.f32 %v1817_v43, %v1816_v42  ;;  %v1819_v46 = vpop.f32.mrb[30].mxu1 }
 0x345   : > { %v1820_v47 = vpop.f32.mrb[31].mxu1 }
 0x346   : > { %1732 = vst [vmem:[%s2471_s14 + $0x30] sm:$0xff] %v1720_v44   ;;  %v1395_v48 = vadd.f32 %v1818_v45, %v2464_v31  ;;  %v1821_v49 = vadd.f32 %v1820_v47, %v1819_v46 }
 0x348   : > { %v1396_v50 = vadd.f32 %v1821_v49, %v2464_v31  ;;  %v1411_v51 = vmax.f32 %v1395_v48, 0.0 }
 0x34a   : > { %v1412_v52 = vmax.f32 %v1396_v50, 0.0 }
 0x34c   : > { %v1725_v53 = vpack.c.bf16 %v1412_v52, %v1411_v51 }
 0x34e   : > { %1733 = vst [vmem:[%s2471_s14 + $0x38] sm:$0xff] %v1725_v53  }
 0x34f   : > { %2056 = shalt.err (!%p2053_p6)
}
 0x350   : > { %s2057_s27 = scalar_lea.hbm %s2499_s15, 1024  ;;  %s2061_s30 = scalar_lea.hbm %s2558_s6, 2048 }
 0x351   : > { %p2058_p7 = scmp.ne.s32.totalorder %s2499_s15, %s2057_s27  ;;  %p2062_p0 = scmp.lt.u32.totalorder %s2499_s15, %s2558_s6 }
 0x352   : > { %p2063_p1 = scmp.lt.u32.totalorder %s2061_s30, %s2057_s27  ;;  %p2065_p4 = scmp.lt.u32.totalorder %s2057_s27, %s2499_s15 }
 0x353   : > { %p2059_p9 = pnand %p2058_p7, %p2574_p8 }
 0x354   : > { %p2064_p13 = por %p2063_p1, %p2062_p0 }
 0x355   : > { %p2060_p12 = pneg %p2059_p9 }
 0x356   : > { %p2066_p10 = por %p2065_p4, %p2064_p13 }
 0x358   : > { %p2067_p11 = pnand %p2066_p10, %p2060_p12 }
 0x35a   : > { %2070 = shalt.err (!%p2067_p11)
}
 0x35b   : > { %s2139_s14 = smov 64   ;;  %s2140_s25 = smov 4  }
 0x35c   : > { %1878 = dma.vmem_to_hbm [thread:$0]  (%p2574_p8), %s2501_s29, 1024, %s2499_s15, %s2506_s17, %s2139_s14, %s2139_s14, %s2140_s25  }
 0x35d PF: > { %p1895_p2 = scmp.ge.s32.totalorder %s2129_s26, 2  ;;  %s1522_s16 = sand.u32 1, %s2109_s21  }
 0x35e   : > { %p2575_p3 = scmp.ne.s32.totalorder %s2568_s9, 0  ;;  %s1523_s18 = scalar_lea.sflag [#allocation5], %s1522_s16 }
 0x360   : > { %p1888_p5 = pnand %p1895_p2, %p2575_p3 }
 0x362   : > { %2104 = dma.done.wait (!%p1888_p5), %s1523_s18, 1024  }
 0x363   : > { %2106 = vsyncadd (!%p1888_p5), %s1523_s18, 4294966272  ;;  %s21_s26 = sadd.s32 1, %s2129_s26   ;;  %s2576_s24 = sld [smem:[#allocation12_spill]] }
 0x364   : > { %p18_p6 = scmp.ge.s32.totalorder %s21_s26, 4   ;;  %s2577_s25 = sld [smem:[#allocation13_spill]] }
 0x365   : > { %s2578_s21 = smov %s2113_s22  ;;  %s2579_s22 = smov %s2117_s23 }
 0x366   : > { %s2580_s23 = smov %s2229_s10  ;;  %20 = sbr.rel (!%p18_p6) target bundleno = 6 (0x6), region = 98 }
 0x36d   :  { %1528 = vsyncpa [#allocation4], 1 }
 0x36e   :  { %1530 = vsyncpa [#allocation4 + $0x1], 1 }
 0x36f   :  { %1531 = vsyncpa [#allocation7], 1 }
 0x370   :  { %1532 = vsyncpa [#allocation5], 1 }
 0x371   :  { %1534 = vsyncpa [#allocation5 + $0x1], 1 }

</bundles_post_ra>
